<compile_context>
chip_gen: v5e
topology: v5e:2x2
jax: 0.10.0
libtpu: 0.0.40
codegen_flags: <defaults>
</compile_context>

<pallas_src>
import math

import jax
import jax.numpy as jnp
from jax import lax
from jax.experimental import pallas as pl
from jax.experimental.pallas import tpu as pltpu

NUM_INPUTS = 32
NUM_ACTIONS = 4
HIDDEN = 64
HEAD = 2 * NUM_ACTIONS
LOG_STD_MIN = -20.0
LOG_STD_MAX = 2.0
LRELU_SLOPE = 0.01              # PyTorch nn.LeakyReLU default negative_slope
_HALF_LOG_2PI = 0.5 * math.log(2.0 * math.pi)


def _leaky_relu(x, slope=LRELU_SLOPE):
    return jnp.where(x >= 0, x, slope * x)


def gaussian_actor_kernel(x_ref, w1_ref, b1_ref, w2_ref, b2_ref, w3_ref, b3_ref,
                          epsT_ref, act_ref, ent_ref):
    # x arrives batch-first (TB, IN); contract its minor dim on the MXU via
    # dot_general dimension numbers -> no relayout of x in wrapper or kernel.
    # TODO(synk): optional bf16 cast of x/W for more MXU throughput where
    # tolerances allow (would break the 1e-5/1e-4 checks below).
    x = x_ref[...]                                                       # (TB, IN)
    h1 = lax.dot_general(w1_ref[...], x, (((1,), (1,)), ((), ())),
                         preferred_element_type=jnp.float32) + b1_ref[...]
    h1 = _leaky_relu(h1)                                                 # (H, TB)
    h2 = jnp.dot(w2_ref[...], h1, preferred_element_type=jnp.float32) + b2_ref[...]
    h2 = _leaky_relu(h2)                                                 # (H, TB)

    # Fused head: single (8, 64) @ (64, TB) matmul; rows [0:A) mean, [A:2A) log_std.
    outT = jnp.dot(w3_ref[...], h2, preferred_element_type=jnp.float32) + b3_ref[...]
    meanT = outT[:NUM_ACTIONS, :]                                        # (A, TB)
    log_stdT = jnp.clip(outT[NUM_ACTIONS:, :], LOG_STD_MIN, LOG_STD_MAX) # (A, TB)
    stdT = jnp.exp(log_stdT)

    epsT = epsT_ref[...]                                                 # (A, TB)
    sampleT = meanT + stdT * epsT                                        # rsample
    actionsT = jnp.tanh(sampleT)

    # Normal(mean, std).log_prob(sample): (sample - mean)/std == eps exactly,
    # so reuse eps and skip the divide.
    normal_lp = -0.5 * epsT * epsT - log_stdT - _HALF_LOG_2PI
    log_probsT = normal_lp - jnp.log(1.0 - actionsT * actionsT + 1e-6)

    # Two lane-dense stores (tb is a multiple of 128) -- no concatenate,
    # no sublane broadcast, separate outputs so only 20 B/elem is written back.
    act_ref[...] = actionsT                                              # (A, TB)
    ent_ref[...] = jnp.sum(log_probsT, axis=0, keepdims=True)            # (1, TB)


def _pick_tile(batch, tb_max):
    """Pick a lane-aligned batch tile: as large as allowed, but keep grid >= 2
    (when the batch permits) so v7x's two TensorCores both get work."""
    b128 = pl.cdiv(batch, 128) * 128
    tb = min(tb_max, b128)
    if b128 >= 256:
        half = pl.cdiv(b128 // 128, 2) * 128      # ceil(blocks/2) * 128
        tb = min(tb, half)
    tb = max(128, (tb // 128) * 128)
    b_pad = pl.cdiv(b128, tb) * tb
    return tb, b_pad


def gaussian_actor_forward(x, params, eps, *, tb=2048):
    """x: (B, NUM_INPUTS) f32; eps: (B, NUM_ACTIONS) f32 standard-normal noise.

    Returns (actions (B, A), entropies (B, 1)) -- training-mode forward.
    """
    B = x.shape[0]
    w1, b1, w2, b2, w3, b3 = params  # PyTorch layout: W (out, in), b (out,)

    tb, b_pad = _pick_tile(B, tb)
    grid = (b_pad // tb,)

    # x stays batch-first (no transpose copy); pad only if the batch is ragged.
    x_p = x.astype(jnp.float32)
    if b_pad > B:
        x_p = jnp.pad(x_p, ((0, b_pad - B), (0, 0)))
    # eps is tiny (4 f32/elem); wrapper-side transpose keeps the epilogue
    # batch-on-lanes without a standalone in-kernel transpose.
    epsT = eps.astype(jnp.float32).T
    if b_pad > B:
        epsT = jnp.pad(epsT, ((0, 0), (0, b_pad - B)))

    b1c = b1.reshape(HIDDEN, 1)
    b2c = b2.reshape(HIDDEN, 1)
    b3c = b3.reshape(HEAD, 1)

    # Weights/biases stay resident in VMEM across the batch grid; x / eps /
    # outputs are streamed with automatic double-buffered DMA.
    resident = lambda shape: pl.BlockSpec(shape, lambda i: (0, 0))

    flops = 2 * b_pad * (NUM_INPUTS * HIDDEN + HIDDEN * HIDDEN + HIDDEN * HEAD)
    bytes_accessed = (b_pad * 4 * (NUM_INPUTS + NUM_ACTIONS + NUM_ACTIONS + 1)
                      + 4 * (HIDDEN * NUM_INPUTS + HIDDEN * HIDDEN + HEAD * HIDDEN
                             + 2 * HIDDEN + HEAD))

    actT, entT = pl.pallas_call(
        gaussian_actor_kernel,
        out_shape=(jax.ShapeDtypeStruct((NUM_ACTIONS, b_pad), jnp.float32),
                   jax.ShapeDtypeStruct((1, b_pad), jnp.float32)),
        grid=grid,
        in_specs=[
            pl.BlockSpec((tb, NUM_INPUTS), lambda i: (i, 0)),   # x   (TB, 32)
            resident((HIDDEN, NUM_INPUTS)),                     # W1  (64, 32)
            resident((HIDDEN, 1)),                              # b1  (64, 1)
            resident((HIDDEN, HIDDEN)),                         # W2  (64, 64)
            resident((HIDDEN, 1)),                              # b2  (64, 1)
            resident((HEAD, HIDDEN)),                           # W3  (8, 64)
            resident((HEAD, 1)),                                # b3  (8, 1)
            pl.BlockSpec((NUM_ACTIONS, tb), lambda i: (0, i)),  # eps^T (4, TB)
        ],
        out_specs=[
            pl.BlockSpec((NUM_ACTIONS, tb), lambda i: (0, i)),  # actions^T (4, TB)
            pl.BlockSpec((1, tb), lambda i: (0, i)),            # entropy   (1, TB)
        ],
        compiler_params=pltpu.CompilerParams(
            dimension_semantics=("parallel",),        # shards batch grid on v7x's 2 TCs
            vmem_limit_bytes=32 * 1024 * 1024,        # explicit; tiles use << this
        ),
        cost_estimate=pl.CostEstimate(
            flops=flops,
            transcendentals=12 * b_pad,               # exp + tanh + log per action
            bytes_accessed=bytes_accessed,
        ),
    )(x_p, w1, b1c, w2, b2c, w3, b3c, epsT)

    actions = actT[:, :B].T                       # (B, A)
    entropies = entT[:, :B].T                     # (B, 1)
    return actions, entropies


def init_params(key):
    """Deterministic synthetic parameters in PyTorch Linear layout (out, in) / (out,)."""
    ks = jax.random.split(key, 6)
    feats = [NUM_INPUTS, HIDDEN, HIDDEN, HEAD]
    params = []
    for i in range(3):
        fan_in, fan_out = feats[i], feats[i + 1]
        scale = 1.0 / math.sqrt(fan_in)
        w = jax.random.uniform(ks[2 * i], (fan_out, fan_in), jnp.float32, -scale, scale)
        b = jax.random.uniform(ks[2 * i + 1], (fan_out,), jnp.float32, -scale, scale)
        params += [w, b]
    return tuple(params)


def reference_forward(x, params, eps):
    """Pure-JAX reference mirroring the PyTorch module (training mode)."""
    w1, b1, w2, b2, w3, b3 = params
    h1 = _leaky_relu(x @ w1.T + b1)
    h2 = _leaky_relu(h1 @ w2.T + b2)
    out = h2 @ w3.T + b3
    mean = out[:, :NUM_ACTIONS]
    log_std = jnp.clip(out[:, NUM_ACTIONS:], LOG_STD_MIN, LOG_STD_MAX)
    std = jnp.exp(log_std)
    sample = mean + std * eps
    actions = jnp.tanh(sample)
    z = (sample - mean) / std
    lp = -0.5 * z * z - log_std - _HALF_LOG_2PI
    lp = lp - jnp.log(1.0 - actions * actions + 1e-6)
    return actions, jnp.sum(lp, axis=-1, keepdims=True)


if __name__ == "__main__":
    key = jax.random.PRNGKey(0)
    k_param, k_x, k_eps = jax.random.split(key, 3)

    params = init_params(k_param)

    # Primary check: B=256 -> tb=128, grid=(2,) (exercises the pipelined batch grid).
    B = 256
    x = jax.random.normal(k_x, (B, NUM_INPUTS), jnp.float32)
    eps = jax.random.normal(k_eps, (B, NUM_ACTIONS), jnp.float32)

    actions, entropies = gaussian_actor_forward(x, params, eps)
    jax.block_until_ready((actions, entropies))

    ref_actions, ref_entropies = reference_forward(x, params, eps)
    assert actions.shape == (B, NUM_ACTIONS)
    assert entropies.shape == (B, 1)
    assert jnp.allclose(actions, ref_actions, atol=1e-5, rtol=1e-5)
    assert jnp.allclose(entropies, ref_entropies, atol=1e-4, rtol=1e-4)

    # Ragged-batch check: B=100 -> lane pad to 128, grid=(1,); pad lanes are sliced away.
    B2 = 100
    x2 = jax.random.normal(jax.random.PRNGKey(1), (B2, NUM_INPUTS), jnp.float32)
    eps2 = jax.random.normal(jax.random.PRNGKey(2), (B2, NUM_ACTIONS), jnp.float32)
    a2, e2 = gaussian_actor_forward(x2, params, eps2)
    jax.block_until_ready((a2, e2))
    ra2, re2 = reference_forward(x2, params, eps2)
    assert a2.shape == (B2, NUM_ACTIONS) and e2.shape == (B2, 1)
    assert jnp.allclose(a2, ra2, atol=1e-5, rtol=1e-5)
    assert jnp.allclose(e2, re2, atol=1e-4, rtol=1e-4)

    print("KERNEL_OK")
</pallas_src>

<mosaic_0001>
module attributes {stable_mosaic.version = 11 : i64} {
  func.func @gaussian_actor_kernel(%arg0: i32, %arg1: memref<128x32xf32, #tpu.memory_space<vmem>>, %arg2: memref<64x32xf32, #tpu.memory_space<vmem>>, %arg3: memref<64x1xf32, #tpu.memory_space<vmem>>, %arg4: memref<64x64xf32, #tpu.memory_space<vmem>>, %arg5: memref<64x1xf32, #tpu.memory_space<vmem>>, %arg6: memref<8x64xf32, #tpu.memory_space<vmem>>, %arg7: memref<8x1xf32, #tpu.memory_space<vmem>>, %arg8: memref<4x128xf32, #tpu.memory_space<vmem>>, %arg9: memref<4x128xf32, #tpu.memory_space<vmem>>, %arg10: memref<1x128xf32, #tpu.memory_space<vmem>>) attributes {dimension_semantics = [#tpu.dimension_semantics<parallel>], iteration_bounds = array<i64: 2>, scalar_prefetch = 0 : i64, scratch_operands = 0 : i64, tpu.core_type = #tpu.core_type<tc>, window_params = [{transform_indices = @transform_0, window_bounds = array<i64: 128, 32>}, {pipeline_mode = #tpu.pipeline_mode<synchronous>, transform_indices = @transform_1, window_bounds = array<i64: 64, 32>}, {pipeline_mode = #tpu.pipeline_mode<synchronous>, transform_indices = @transform_2, window_bounds = array<i64: 64, 1>}, {pipeline_mode = #tpu.pipeline_mode<synchronous>, transform_indices = @transform_3, window_bounds = array<i64: 64, 64>}, {pipeline_mode = #tpu.pipeline_mode<synchronous>, transform_indices = @transform_4, window_bounds = array<i64: 64, 1>}, {pipeline_mode = #tpu.pipeline_mode<synchronous>, transform_indices = @transform_5, window_bounds = array<i64: 8, 64>}, {pipeline_mode = #tpu.pipeline_mode<synchronous>, transform_indices = @transform_6, window_bounds = array<i64: 8, 1>}, {transform_indices = @transform_7, window_bounds = array<i64: 4, 128>}, {transform_indices = @transform_8, window_bounds = array<i64: 4, 128>}, {transform_indices = @transform_9, window_bounds = array<i64: 1, 128>}]} {
    %c0 = arith.constant 0 : index
    %c0_0 = arith.constant 0 : index
    %0 = vector.load %arg1[%c0, %c0_0] : memref<128x32xf32, #tpu.memory_space<vmem>>, vector<128x32xf32>
    %c0_1 = arith.constant 0 : index
    %c0_2 = arith.constant 0 : index
    %1 = vector.load %arg2[%c0_1, %c0_2] : memref<64x32xf32, #tpu.memory_space<vmem>>, vector<64x32xf32>
    %cst = arith.constant dense<0.000000e+00> : vector<64x128xf32>
    %2 = tpu.matmul %1, %0, %cst {dimension_numbers = #tpu.dot_dimension_numbers<[1], [1], [0], [0], [0, 0, 1, 0], [], []>} : vector<64x32xf32>, vector<128x32xf32>, vector<64x128xf32> -> vector<64x128xf32>
    %c0_3 = arith.constant 0 : index
    %c0_4 = arith.constant 0 : index
    %3 = vector.load %arg3[%c0_3, %c0_4] : memref<64x1xf32, #tpu.memory_space<vmem>>, vector<64x1xf32>
    %4 = vector.broadcast %3 : vector<64x1xf32> to vector<64x128xf32>
    %5 = arith.addf %2, %4 : vector<64x128xf32>
    %cst_5 = arith.constant 0.000000e+00 : f32
    %6 = vector.broadcast %cst_5 : f32 to vector<64x128xf32>
    %7 = arith.cmpf oge, %5, %6 : vector<64x128xf32>
    %cst_6 = arith.constant 0.00999999977 : f32
    %8 = vector.broadcast %cst_6 : f32 to vector<64x128xf32>
    %9 = arith.mulf %8, %5 : vector<64x128xf32>
    %10 = arith.select %7, %5, %9 : vector<64x128xi1>, vector<64x128xf32>
    %c0_7 = arith.constant 0 : index
    %c0_8 = arith.constant 0 : index
    %11 = vector.load %arg4[%c0_7, %c0_8] : memref<64x64xf32, #tpu.memory_space<vmem>>, vector<64x64xf32>
    %cst_9 = arith.constant dense<0.000000e+00> : vector<64x128xf32>
    %12 = tpu.matmul %11, %10, %cst_9 {dimension_numbers = #tpu.dot_dimension_numbers<[1], [0], [0], [1], [0, 0, 1, 1], [], []>} : vector<64x64xf32>, vector<64x128xf32>, vector<64x128xf32> -> vector<64x128xf32>
    %c0_10 = arith.constant 0 : index
    %c0_11 = arith.constant 0 : index
    %13 = vector.load %arg5[%c0_10, %c0_11] : memref<64x1xf32, #tpu.memory_space<vmem>>, vector<64x1xf32>
    %14 = vector.broadcast %13 : vector<64x1xf32> to vector<64x128xf32>
    %15 = arith.addf %12, %14 : vector<64x128xf32>
    %cst_12 = arith.constant 0.000000e+00 : f32
    %16 = vector.broadcast %cst_12 : f32 to vector<64x128xf32>
    %17 = arith.cmpf oge, %15, %16 : vector<64x128xf32>
    %cst_13 = arith.constant 0.00999999977 : f32
    %18 = vector.broadcast %cst_13 : f32 to vector<64x128xf32>
    %19 = arith.mulf %18, %15 : vector<64x128xf32>
    %20 = arith.select %17, %15, %19 : vector<64x128xi1>, vector<64x128xf32>
    %c0_14 = arith.constant 0 : index
    %c0_15 = arith.constant 0 : index
    %21 = vector.load %arg6[%c0_14, %c0_15] : memref<8x64xf32, #tpu.memory_space<vmem>>, vector<8x64xf32>
    %cst_16 = arith.constant dense<0.000000e+00> : vector<8x128xf32>
    %22 = tpu.matmul %21, %20, %cst_16 {dimension_numbers = #tpu.dot_dimension_numbers<[1], [0], [0], [1], [0, 0, 1, 1], [], []>} : vector<8x64xf32>, vector<64x128xf32>, vector<8x128xf32> -> vector<8x128xf32>
    %c0_17 = arith.constant 0 : index
    %c0_18 = arith.constant 0 : index
    %23 = vector.load %arg7[%c0_17, %c0_18] : memref<8x1xf32, #tpu.memory_space<vmem>>, vector<8x1xf32>
    %24 = vector.broadcast %23 : vector<8x1xf32> to vector<8x128xf32>
    %25 = arith.addf %22, %24 : vector<8x128xf32>
    %26 = vector.extract_strided_slice %25 {offsets = [0, 0], sizes = [4, 128], strides = [1, 1]} : vector<8x128xf32> to vector<4x128xf32>
    %27 = vector.extract_strided_slice %25 {offsets = [4, 0], sizes = [4, 128], strides = [1, 1]} : vector<8x128xf32> to vector<4x128xf32>
    %cst_19 = arith.constant -2.000000e+01 : f32
    %cst_20 = arith.constant 2.000000e+00 : f32
    %28 = vector.broadcast %cst_19 : f32 to vector<4x128xf32>
    %29 = arith.maximumf %28, %27 : vector<4x128xf32>
    %30 = vector.broadcast %cst_20 : f32 to vector<4x128xf32>
    %31 = arith.minimumf %30, %29 : vector<4x128xf32>
    %32 = math.exp %31 : vector<4x128xf32>
    %c0_21 = arith.constant 0 : index
    %c0_22 = arith.constant 0 : index
    %33 = vector.load %arg8[%c0_21, %c0_22] : memref<4x128xf32, #tpu.memory_space<vmem>>, vector<4x128xf32>
    %34 = arith.mulf %32, %33 : vector<4x128xf32>
    %35 = arith.addf %26, %34 : vector<4x128xf32>
    %36 = math.tanh %35 : vector<4x128xf32>
    %cst_23 = arith.constant -5.000000e-01 : f32
    %37 = vector.broadcast %cst_23 : f32 to vector<4x128xf32>
    %38 = arith.mulf %37, %33 : vector<4x128xf32>
    %39 = arith.mulf %38, %33 : vector<4x128xf32>
    %40 = arith.subf %39, %31 : vector<4x128xf32>
    %cst_24 = arith.constant 0.918938517 : f32
    %41 = vector.broadcast %cst_24 : f32 to vector<4x128xf32>
    %42 = arith.subf %40, %41 : vector<4x128xf32>
    %43 = arith.mulf %36, %36 : vector<4x128xf32>
    %cst_25 = arith.constant 1.000000e+00 : f32
    %44 = vector.broadcast %cst_25 : f32 to vector<4x128xf32>
    %45 = arith.subf %44, %43 : vector<4x128xf32>
    %cst_26 = arith.constant 9.99999997E-7 : f32
    %46 = vector.broadcast %cst_26 : f32 to vector<4x128xf32>
    %47 = arith.addf %45, %46 : vector<4x128xf32>
    %48 = math.log %47 : vector<4x128xf32>
    %49 = arith.subf %42, %48 : vector<4x128xf32>
    %c0_27 = arith.constant 0 : index
    %c0_28 = arith.constant 0 : index
    %50 = vector.load %arg9[%c0_27, %c0_28] : memref<4x128xf32, #tpu.memory_space<vmem>>, vector<4x128xf32>
    tpu.vector_store %arg9[%c0_27, %c0_28], %36 {strides = array<i32>} : memref<4x128xf32, #tpu.memory_space<vmem>>, vector<4x128xf32>,
    %cst_29 = arith.constant dense<0.000000e+00> : vector<128xf32>
    %51 = vector.multi_reduction <add>, %49, %cst_29 [0] : vector<4x128xf32> to vector<128xf32>
    %52 = vector.shape_cast %51 : vector<128xf32> to vector<1x128xf32>
    %c0_30 = arith.constant 0 : index
    %c0_31 = arith.constant 0 : index
    %53 = vector.load %arg10[%c0_30, %c0_31] : memref<1x128xf32, #tpu.memory_space<vmem>>, vector<1x128xf32>
    tpu.vector_store %arg10[%c0_30, %c0_31], %52 {strides = array<i32>} : memref<1x128xf32, #tpu.memory_space<vmem>>, vector<1x128xf32>,
    return
  }
  func.func @transform_0(%arg0: i32) -> (i32, i32) {
    %c0_i32 = arith.constant 0 : i32
    %c0_i32_0 = arith.constant 0 : i32
    return %arg0, %c0_i32 : i32, i32
  }
  func.func @transform_1(%arg0: i32) -> (i32, i32) {
    %c0_i32 = arith.constant 0 : i32
    %c0_i32_0 = arith.constant 0 : i32
    %c0_i32_1 = arith.constant 0 : i32
    return %c0_i32, %c0_i32_0 : i32, i32
  }
  func.func @transform_2(%arg0: i32) -> (i32, i32) {
    %c0_i32 = arith.constant 0 : i32
    %c0_i32_0 = arith.constant 0 : i32
    %c0_i32_1 = arith.constant 0 : i32
    return %c0_i32, %c0_i32_0 : i32, i32
  }
  func.func @transform_3(%arg0: i32) -> (i32, i32) {
    %c0_i32 = arith.constant 0 : i32
    %c0_i32_0 = arith.constant 0 : i32
    %c0_i32_1 = arith.constant 0 : i32
    return %c0_i32, %c0_i32_0 : i32, i32
  }
  func.func @transform_4(%arg0: i32) -> (i32, i32) {
    %c0_i32 = arith.constant 0 : i32
    %c0_i32_0 = arith.constant 0 : i32
    %c0_i32_1 = arith.constant 0 : i32
    return %c0_i32, %c0_i32_0 : i32, i32
  }
  func.func @transform_5(%arg0: i32) -> (i32, i32) {
    %c0_i32 = arith.constant 0 : i32
    %c0_i32_0 = arith.constant 0 : i32
    %c0_i32_1 = arith.constant 0 : i32
    return %c0_i32, %c0_i32_0 : i32, i32
  }
  func.func @transform_6(%arg0: i32) -> (i32, i32) {
    %c0_i32 = arith.constant 0 : i32
    %c0_i32_0 = arith.constant 0 : i32
    %c0_i32_1 = arith.constant 0 : i32
    return %c0_i32, %c0_i32_0 : i32, i32
  }
  func.func @transform_7(%arg0: i32) -> (i32, i32) {
    %c0_i32 = arith.constant 0 : i32
    %c0_i32_0 = arith.constant 0 : i32
    return %c0_i32, %arg0 : i32, i32
  }
  func.func @transform_8(%arg0: i32) -> (i32, i32) {
    %c0_i32 = arith.constant 0 : i32
    %c0_i32_0 = arith.constant 0 : i32
    return %c0_i32, %arg0 : i32, i32
  }
  func.func @transform_9(%arg0: i32) -> (i32, i32) {
    %c0_i32 = arith.constant 0 : i32
    %c0_i32_0 = arith.constant 0 : i32
    return %c0_i32, %arg0 : i32, i32
  }
}

</mosaic_0001>

<bundles_post_ra>
// kernel: tpu_custom_call.1
= control target key start
LH: loop header
LB: loop body
LE: loop exit
PB: predicated region body
PF: predicated region fallthrough
CT: control target
= control target key end

     0   :  { %15 = vsyncpa [#allocation3], 0  ;;  %s1488_s0 = inlined_call_operand.vmem [shape: f32[256,32], index: 0, kind: input, shape index: {}]   ;;  %s1489_s1 = inlined_call_operand.vmem [shape: f32[64,32], index: 1, kind: input, shape index: {}]   ;;  %s1490_s2 = inlined_call_operand.vmem [shape: f32[64,1], index: 2, kind: input, shape index: {}]   ;;  %s1491_s3 = inlined_call_operand.vmem [shape: f32[64,64], index: 3, kind: input, shape index: {}]   ;;  %s1492_s4 = inlined_call_operand.vmem [shape: f32[64,1], index: 4, kind: input, shape index: {}]   ;;  %s1493_s5 = inlined_call_operand.vmem [shape: f32[8,64], index: 5, kind: input, shape index: {}]   ;;  %s1494_s6 = inlined_call_operand.vmem [shape: f32[8,1], index: 6, kind: input, shape index: {}]   ;;  %s1495_s7 = inlined_call_operand.vmem [shape: f32[4,256], index: 7, kind: input, shape index: {}]   ;;  %s1496_s8 = inlined_call_operand.hbm [shape: f32[4,256], index: 8, kind: output, shape index: {0}]   ;;  %s1497_s9 = inlined_call_operand.hbm [shape: f32[1,256], index: 9, kind: output, shape index: {1}]  }
   0x1   :  { %17 = vsyncpa [#allocation3 + $0x1], 0 }
   0x2   :  { %18 = vsyncpa [#allocation5], 0 }
   0x3   :  { %20 = vsyncpa [#allocation5 + $0x1], 0  ;;  %s1194_s30 = smov 0   ;;  %s1196_s10 = smov 0  }
   0x4   :  { %s1198_s11 = smov 0   ;;  %s1200_s12 = smov 0  }
   0x5 LB: > { %s1215_s13 = sadd.s32 4294967295, %s1141_s12   ;;  %s915_s14 = sadd.s32 4294967294, %s1141_s12   ;;  %s1141_s12 = sphi %s1200_s12, %s1503_s12   ;;  %s1137_s11 = sphi %s1198_s11, %s1502_s11   ;;  %s1133_s10 = sphi %s1196_s10, %s1501_s10   ;;  %s1129_s30 = sphi %s1194_s30, %s1500_s30  }
   0x6   : > { %s1219_s15 = sadd.s32 1, %s1141_s12   ;;  %s211_s16 = sadd.s32 1, %s1137_s11 }
   0x7   : > { %s208_s17 = ssub.s32 %s1141_s12, %s1219_s15  ;;  %p221_p0 = scmp.ne.s32.totalorder %s1137_s11, %s1133_s10 }
   0x8   : > { %p209_p1 = scmp.eq.s32.totalorder %s208_s17, 0  ;;  %p222_p2 = scmp.eq.s32.totalorder %s1215_s13, 1 }
   0x9   : > { %p227_p3 = scmp.ne.s32.totalorder %s1133_s10, %s1129_s30  ;;  %p228_p4 = scmp.eq.s32.totalorder %s915_s14, 1 }
   0xa   : > { %s1230_s18 = scalar_select %p209_p1, %s1137_s11, %s211_s16  }
   0xb   : > { %p1232_p5 = por %p222_p2, %p221_p0  ;;  %p1236_p6 = por %p228_p4, %p227_p3 }
   0xc   : > { %p918_p7 = scmp.ge.s32.totalorder %s1141_s12, 1  ;;  %p306_p8 = scmp.lt.s32.totalorder %s1141_s12, 3 }
   0xe   : > { %p307_p9 = pnand %p918_p7, %p306_p8 }
   0xf   : > { %s920_s21 = sshll.u32 (!%p307_p9), %s1215_s13, 4  ;;  %p356_p11 = scmp.lt.s32.totalorder (!%p307_p9), %s1215_s13, 1 }
  0x10   : > { %310 = sbr.rel (%p307_p9) target bundleno = 651 (0x28b), region = 52  ;;  %p351_p10 = scmp.lt.s32.totalorder (!%p307_p9), %s920_s21, 31 }
  0x11   : > { %s1437_s29 = sand.u32 (!%p307_p9), 1, %s1133_s10   ;;  %s958_s14 = sshll.u32 (!%p307_p9), %s1215_s13, 2 }
  0x12   : > { %s919_s16 = sshll.u32 (!%p307_p9), %s1437_s29, 2  ;;  %s784_s26 = scalar_lea.sflag (!%p307_p9), [#allocation3], %s1437_s29 }
  0x13   : > { %s343_s23 = scalar_lea.vmem (!%p307_p9), [#allocation2], %s919_s16  ;;  %s1067_s16 = scalar_lea.hbm (!%p307_p9), %s1496_s8, 8 }
  0x15   : > { %s1505_s21 = smov (!%p351_p10, %s920_s21), 31  ;;  %vm432_vm0 = vcmask 261120   ;;  %v391_v5 = vld [vmem:[%s1490_s2 + $0x38] sm:$0xff]  ;;  %v1143_v7 = vmov 0   ;;  %v389_v8 = vld [vmem:[%s1490_s2 + $0x28] sm:$0xff]  ;;  %v390_v10 = vld [vmem:[%s1490_s2 + $0x30] sm:$0xff] }
  0x16   : > { %s921_s22 = sshll.u32 %s1505_s21, 3  ;;  %1038 = vset.pattern.permute.xlu0 %v1143_v7  ;;  %1039 = vset.pattern.permute.xlu1 %v1143_v7  ;;  %v388_v12 = vld [vmem:[%s1490_s2 + $0x20] sm:$0xff]  ;;  %v385_v14 = vld [vmem:[%s1490_s2 + $0x8] sm:$0xff]  ;;  %v584_v18 = vld [vmem:[%s1492_s4 + $0x30] sm:$0xff]  ;;  %vm626_vm9 = vcmask 523264  }
  0x17   : > { %s1246_s25 = scalar_lea.vmem %s1488_s0, %s921_s22  ;;  %429 = vperm.xlu0 %1038, %v391_v5   ;;  %1040 = vset.pattern.permute.xlu2 %v1143_v7  ;;  %v384_v16 = vld [vmem:[%s1490_s2] sm:$0xff]  ;;  %v583_v20 = vld [vmem:[%s1492_s4 + $0x28] sm:$0xff]  ;;  %v581_v22 = vld [vmem:[%s1492_s4 + $0x18] sm:$0xff]  ;;  %s798_s22 = scalar_lea.hbm %s1496_s8, %s958_s14 }
  0x18   : > { %v375_v0 = vld [vmem:[%s1246_s25 + $0x78] sm:$0xff]  ;;  %v374_v1 = vld [vmem:[%s1246_s25 + $0x70] sm:$0xff]  ;;  %v373_v2 = vld [vmem:[%s1246_s25 + $0x68] sm:$0xff]  ;;  %419 = vperm.xlu1 %1039, %v389_v8  }
  0x19   : > { %962 = vmatpush.xpose.msk.msra.mxu3 %vm432_vm0, %v375_v0  ;;  %961 = vmatpush.xpose.msk.msra.mxu2 %vm432_vm0, %v375_v0  ;;  %v372_v3 = vld [vmem:[%s1246_s25 + $0x60] sm:$0xff]  ;;  %v371_v4 = vld [vmem:[%s1246_s25 + $0x58] sm:$0xff]  ;;  %v370_v6 = vld [vmem:[%s1246_s25 + $0x50] sm:$0xff] }
  0x1a   : > { %923 = vmatpush.xpose.msk.msra.mxu0 %vm432_vm0, %v375_v0  ;;  %v369_v9 = vld [vmem:[%s1246_s25 + $0x48] sm:$0xff]  ;;  %v368_v11 = vld [vmem:[%s1246_s25 + $0x40] sm:$0xff]  ;;  %v367_v13 = vld [vmem:[%s1246_s25 + $0x38] sm:$0xff] }
  0x1b   : > { %v366_v15 = vld [vmem:[%s1246_s25 + $0x30] sm:$0xff]  ;;  %v365_v17 = vld [vmem:[%s1246_s25 + $0x28] sm:$0xff]  ;;  %v364_v19 = vld [vmem:[%s1246_s25 + $0x20] sm:$0xff] }
  0x1c   : > { %v363_v21 = vld [vmem:[%s1246_s25 + $0x18] sm:$0xff]  ;;  %v362_v24 = vld [vmem:[%s1246_s25 + $0x10] sm:$0xff]  ;;  %v361_v26 = vld [vmem:[%s1246_s25 + $0x8] sm:$0xff] }
  0x1d   : > { %964 = vmatpush.xpose.msk.msra.mxu3 %vm432_vm0, %v374_v1  ;;  %963 = vmatpush.xpose.msk.msra.mxu2 %vm432_vm0, %v374_v1  ;;  %v387_v23 = vld [vmem:[%s1490_s2 + $0x18] sm:$0xff]  ;;  %v580_v25 = vld [vmem:[%s1492_s4 + $0x10] sm:$0xff]  ;;  %v578_v28 = vld [vmem:[%s1492_s4] sm:$0xff] }
  0x1e   : > { %924 = vmatpush.xpose.msk.msra.mxu0 %vm432_vm0, %v374_v1  ;;  %409 = vperm.xlu2 %1040, %v387_v23   ;;  %v386_v27 = vld [vmem:[%s1490_s2 + $0x10] sm:$0xff]  ;;  %v360_v29 = vld [vmem:[%s1246_s25] sm:$0xff]  ;;  %v381_v31 = vld [vmem:[%s1489_s1 + $0x28] sm:$0xff]  ;;  %s357_s25 = scalar_select %p356_p11, %s1215_s13, 1 }
  0x1f   : > { %424 = vperm.xlu0 %1038, %v390_v10   ;;  %v717_v30 = vld [vmem:[%s1494_s6] sm:$0xff]  ;;  %v379_v32 = vld [vmem:[%s1489_s1 + $0x18] sm:$0xff]  ;;  %v382_v35 = vld [vmem:[%s1489_s1 + $0x30] sm:$0xff] }
  0x20   : > { %414 = vperm.xlu1 %1039, %v388_v12   ;;  %v376_v33 = vld [vmem:[%s1489_s1] sm:$0xff]  ;;  %v585_v34 = vld [vmem:[%s1492_s4 + $0x38] sm:$0xff]  ;;  %v377_v37 = vld [vmem:[%s1489_s1 + $0x8] sm:$0xff]  ;;  %s922_s24 = sshll.u32 %s357_s25, 2  ;;  %s800_s25 = sshll.u32 %s343_s23, 4  ;;  %s801_s25 = int_to_ptr.vmem [resolvable:$true] %s800_s25 }
  0x21   : > { %966 = vmatpush.xpose.msk.msra.mxu3 %vm432_vm0, %v373_v2  ;;  %965 = vmatpush.xpose.msk.msra.mxu2 %vm432_vm0, %v373_v2  ;;  %v380_v36 = vld [vmem:[%s1489_s1 + $0x20] sm:$0xff]  ;;  %v383_v39 = vld [vmem:[%s1489_s1 + $0x38] sm:$0xff]  ;;  %v378_v40 = vld [vmem:[%s1489_s1 + $0x10] sm:$0xff]  ;;  %s359_s28 = scalar_lea.vmem %s1495_s7, %s922_s24  ;;  %s802_s24 = sshll.u32 %s798_s22, 4  ;;  %s803_s24 = int_to_ptr.hbm [resolvable:$true] %s802_s24 }
  0x22   : > { %925 = vmatpush.xpose.msk.msra.mxu0 %vm432_vm0, %v373_v2  ;;  %v582_v38 = vld [vmem:[%s1492_s4 + $0x20] sm:$0xff]  ;;  %v579_v41 = vld [vmem:[%s1492_s4 + $0x8] sm:$0xff]  ;;  %s1061_s27 = sshra.s32 %s803_s24, 4  ;;  %s1062_s27 = int_to_ptr.hbm [resolvable:$true] %s1061_s27 }
  0x23   : > { %v575_v23 = vld [vmem:[%s1491_s3 + $0x28] sm:$0xff]  ;;  %p1068_p1 = scmp.lt.s32.totalorder %s1062_s27, %s1496_s8 }
  0x25   : > { %968 = vmatpush.xpose.msk.msra.mxu3 %vm432_vm0, %v372_v3  ;;  %967 = vmatpush.xpose.msk.msra.mxu2 %vm432_vm0, %v372_v3 }
  0x26   : > { %926 = vmatpush.xpose.msk.msra.mxu0 %vm432_vm0, %v372_v3  ;;  %404 = vperm.xlu2 %1040, %v386_v27  }
  0x27   : > { %399 = vperm.xlu0 %1038, %v385_v14  }
  0x28   : > { %394 = vperm.xlu1 %1039, %v384_v16  }
  0x29   : > { %970 = vmatpush.xpose.msk.msra.mxu3 %vm432_vm0, %v371_v4  ;;  %969 = vmatpush.xpose.msk.msra.mxu2 %vm432_vm0, %v371_v4 }
  0x2a   : > { %927 = vmatpush.xpose.msk.msra.mxu0 %vm432_vm0, %v371_v4 }
  0x2d   : > { %972 = vmatpush.xpose.msk.msra.mxu3 %vm432_vm0, %v370_v6  ;;  %971 = vmatpush.xpose.msk.msra.mxu2 %vm432_vm0, %v370_v6 }
  0x2e   : > { %928 = vmatpush.xpose.msk.msra.mxu0 %vm432_vm0, %v370_v6  ;;  %623 = vperm.xlu2 %1040, %v585_v34  }
  0x2f   : > { %618 = vperm.xlu0 %1038, %v584_v18  }
  0x30   : > { %613 = vperm.xlu1 %1039, %v583_v20   ;;  %v572_v20 = vld [vmem:[%s1491_s3 + $0x10] sm:$0xff] }
  0x31   : > { %974 = vmatpush.xpose.msk.msra.mxu3 %vm432_vm0, %v369_v9  ;;  %973 = vmatpush.xpose.msk.msra.mxu2 %vm432_vm0, %v369_v9 }
  0x32   : > { %929 = vmatpush.xpose.msk.msra.mxu0 %vm432_vm0, %v369_v9 }
  0x35   : > { %976 = vmatpush.xpose.msk.msra.mxu3 %vm432_vm0, %v368_v11  ;;  %975 = vmatpush.xpose.msk.msra.mxu2 %vm432_vm0, %v368_v11 }
  0x36   : > { %930 = vmatpush.xpose.msk.msra.mxu0 %vm432_vm0, %v368_v11  ;;  %608 = vperm.xlu2 %1040, %v582_v38  }
  0x37   : > { %603 = vperm.xlu0 %1038, %v581_v22   ;;  %v574_v22 = vld [vmem:[%s1491_s3 + $0x20] sm:$0xff] }
  0x38   : > { %598 = vperm.xlu1 %1039, %v580_v25   ;;  %v577_v25 = vld [vmem:[%s1491_s3 + $0x38] sm:$0xff] }
  0x39   : > { %978 = vmatpush.xpose.msk.msra.mxu3 %vm432_vm0, %v367_v13  ;;  %977 = vmatpush.xpose.msk.msra.mxu2 %vm432_vm0, %v367_v13 }
  0x3a   : > { %931 = vmatpush.xpose.msk.msra.mxu0 %vm432_vm0, %v367_v13 }
  0x3d   : > { %980 = vmatpush.xpose.msk.msra.mxu3 %vm432_vm0, %v366_v15  ;;  %979 = vmatpush.xpose.msk.msra.mxu2 %vm432_vm0, %v366_v15 }
  0x3e   : > { %932 = vmatpush.xpose.msk.msra.mxu0 %vm432_vm0, %v366_v15  ;;  %593 = vperm.xlu2 %1040, %v579_v41  }
  0x3f   : > { %588 = vperm.xlu0 %1038, %v578_v28  }
  0x40   : > { %720 = vperm.xlu1 %1039, %v717_v30  }
  0x41   : > { %982 = vmatpush.xpose.msk.msra.mxu3 %vm432_vm0, %v365_v17  ;;  %981 = vmatpush.xpose.msk.msra.mxu2 %vm432_vm0, %v365_v17 }
  0x42   : > { %933 = vmatpush.xpose.msk.msra.mxu0 %vm432_vm0, %v365_v17  ;;  %v570_v17 = vld [vmem:[%s1491_s3] sm:$0xff] }
  0x45   : > { %984 = vmatpush.xpose.msk.msra.mxu3 %vm432_vm0, %v364_v19  ;;  %983 = vmatpush.xpose.msk.msra.mxu2 %vm432_vm0, %v364_v19 }
  0x46   : > { %934 = vmatpush.xpose.msk.msra.mxu0 %vm432_vm0, %v364_v19  ;;  %v571_v19 = vld [vmem:[%s1491_s3 + $0x8] sm:$0xff] }
  0x49   : > { %986 = vmatpush.xpose.msk.msra.mxu3 %vm432_vm0, %v363_v21  ;;  %985 = vmatpush.xpose.msk.msra.mxu2 %vm432_vm0, %v363_v21 }
  0x4a   : > { %935 = vmatpush.xpose.msk.msra.mxu0 %vm432_vm0, %v363_v21  ;;  %v573_v21 = vld [vmem:[%s1491_s3 + $0x18] sm:$0xff] }
  0x4d   : > { %988 = vmatpush.xpose.msk.msra.mxu3 %vm432_vm0, %v362_v24  ;;  %987 = vmatpush.xpose.msk.msra.mxu2 %vm432_vm0, %v362_v24 }
  0x4e   : > { %936 = vmatpush.xpose.msk.msra.mxu0 %vm432_vm0, %v362_v24  ;;  %v576_v24 = vld [vmem:[%s1491_s3 + $0x30] sm:$0xff] }
  0x51   : > { %990 = vmatpush.xpose.msk.msra.mxu3 %vm432_vm0, %v361_v26  ;;  %989 = vmatpush.xpose.msk.msra.mxu2 %vm432_vm0, %v361_v26 }
  0x52   : > { %937 = vmatpush.xpose.msk.msra.mxu0 %vm432_vm0, %v361_v26 }
  0x55   : > { %992 = vmatpush.xpose.msk.msra.mxu3 %vm432_vm0, %v360_v29  ;;  %991 = vmatpush.xpose.msk.msra.mxu2 %vm432_vm0, %v360_v29 }
  0x56   : > { %938 = vmatpush.xpose.msk.msra.mxu0 %vm432_vm0, %v360_v29 }
  0x58   : > { %944 = vmatmul.msk.f32.vlgmr.msra.gmra.mxu3 %vm432_vm0, %v381_v31  ;;  %942 = vmatmul.msk.f32.vlgmr.msra.gmra.mxu2 %vm432_vm0, %v379_v32 }
  0x59   : > { %939 = vmatmul.msk.f32.vlgmr.msra.gmra.mxu0 %vm432_vm0, %v376_v33 }
  0x60   : > { %945 = vmatmul.msk.f32.gmra.mxu3 %vm432_vm0, %v382_v35  ;;  %943 = vmatmul.msk.f32.gmra.mxu2 %vm432_vm0, %v380_v36 }
  0x61   : > { %940 = vmatmul.msk.f32.gmra.mxu0 %vm432_vm0, %v377_v37 }
  0x68   : > { %946 = vmatmul.msk.f32.gmra.mxu3 %vm432_vm0, %v383_v39 }
  0x69   : > { %941 = vmatmul.msk.f32.gmra.mxu0 %vm432_vm0, %v378_v40 }
  0x78   : > { %v410_v49 = vpop.permute.xlu2 %409 }
  0x80   : > { %v405_v0 = vpop.permute.xlu2 %404 }
  0x88   : > { %v624_v32 = vpop.permute.xlu2 %623 }
  0x89   : > { %v430_v44 = vpop.permute.xlu0 %429 }
  0x8a   : > { %v420_v45 = vpop.permute.xlu1 %419 }
  0x90   : > { %v609_v36 = vpop.permute.xlu2 %608 }
  0x91   : > { %v425_v50 = vpop.permute.xlu0 %424 }
  0x92   : > { %v415_v51 = vpop.permute.xlu1 %414 }
  0x99   : > { %v400_v4 = vpop.permute.xlu0 %399 }
  0x9a   : > { %v395_v8 = vpop.permute.xlu1 %394 }
  0xa1   : > { %v619_v33 = vpop.permute.xlu0 %618 }
  0xa2   : > { %v614_v35 = vpop.permute.xlu1 %613 }
  0xa9   : > { %v604_v38 = vpop.permute.xlu0 %603 }
  0xd6   : > { %v522_v42 = vpop.f32.mrf.mxu0 }
  0xd7   : > { %v523_v9 = vadd.f32 %v522_v42, %v395_v8 }
  0xd9   : > { %v554_v15 = vmul.f32 0.01, %v523_v9  ;;  %vm546_vm8 = vcmp.ge.f32.partialorder %v523_v9, 0.0 }
  0xdb   : > { %v537_v43 = vpop.f32.mrf.mxu3  ;;  %v531_v46 = vpop.f32.mrf.mxu2  ;;  %v562_v18 = vsel %vm546_vm8, %v523_v9, %v554_v15  ;;  %v750_v9 = vld [vmem:[%s359_s28] sm:$0xf]  ;;  %s1063_s28 = scalar_lea.hbm %s1062_s27, 4 }
  0xdc   : > { %v538_v55 = vadd.f32 %v537_v43, %v420_v45  ;;  %v532_v61 = vadd.f32 %v531_v46, %v410_v49  ;;  %p1064_p12 = scmp.ne.s32.totalorder %s1062_s27, %s1063_s28  ;;  %p1069_p2 = scmp.lt.s32.totalorder %s1067_s16, %s1063_s28 }
  0xde   : > { %v525_v48 = vpop.f32.mrf.mxu0  ;;  %v559_v63 = vmul.f32 0.01, %v538_v55  ;;  %vm551_vm3 = vcmp.ge.f32.partialorder %v538_v55, 0.0  ;;  %v557_v7 = vmul.f32 0.01, %v532_v61  ;;  %vm549_vm5 = vcmp.ge.f32.partialorder %v532_v61, 0.0  ;;  %p1065_p13 = pnand %p1064_p12, %p1232_p5  ;;  %p1070_p3 = por %p1069_p2, %p1068_p1 }
  0xdf   : > { %v526_v5 = vadd.f32 %v525_v48, %v400_v4  ;;  %v599_v48 = vpop.permute.xlu1 %598 }
  0xe0   : > { %v567_v6 = vsel %vm551_vm3, %v538_v55, %v559_v63  ;;  %v565_v12 = vsel %vm549_vm5, %v532_v61, %v557_v7  ;;  %p1066_p0 = pneg %p1065_p13 }
  0xe1   : > { %v555_v13 = vmul.f32 0.01, %v526_v5  ;;  %vm547_vm7 = vcmp.ge.f32.partialorder %v526_v5, 0.0 }
  0xe2   : > { %p1071_p4 = pnand %p1070_p3, %p1066_p0 }
  0xe3   : > { %v540_v47 = vpop.f32.mrf.mxu3  ;;  %v534_v53 = vpop.f32.mrf.mxu2  ;;  %v563_v16 = vsel %vm547_vm7, %v526_v5, %v555_v13 }
  0xe4   : > { %v541_v52 = vadd.f32 %v540_v47, %v425_v50  ;;  %v535_v57 = vadd.f32 %v534_v53, %v415_v51 }
  0xe6   : > { %v560_v59 = vmul.f32 0.01, %v541_v52  ;;  %v528_v60 = vpop.f32.mrf.mxu0  ;;  %vm552_vm2 = vcmp.ge.f32.partialorder %v541_v52, 0.0  ;;  %v558_v3 = vmul.f32 0.01, %v535_v57  ;;  %vm550_vm4 = vcmp.ge.f32.partialorder %v535_v57, 0.0 }
  0xe7   : > { %v529_v1 = vadd.f32 %v528_v60, %v405_v0 }
  0xe8   : > { %v568_v2 = vsel %vm552_vm2, %v541_v52, %v560_v59  ;;  %v566_v10 = vsel %vm550_vm4, %v535_v57, %v558_v3  ;;  %v594_v52 = vpop.permute.xlu2 %593  ;;  %v721_v3 = vpop.permute.xlu1 %720 }
  0xe9   : > { %v556_v11 = vmul.f32 0.01, %v529_v1  ;;  %vm548_vm6 = vcmp.ge.f32.partialorder %v529_v1, 0.0 }
  0xeb   : > { %v543_v54 = vpop.f32.mrf.mxu3  ;;  %v564_v14 = vsel %vm548_vm6, %v529_v1, %v556_v11  ;;  %v716_v1 = vld [vmem:[%s1493_s5] sm:$0xff] }
  0xec   : > { %v544_v56 = vadd.f32 %v543_v54, %v430_v44 }
  0xee   : > { %vm553_vm1 = vcmp.ge.f32.partialorder %v544_v56, 0.0  ;;  %v561_v58 = vmul.f32 0.01, %v544_v56 }
  0xf0   : > { %v569_v62 = vsel %vm553_vm1, %v544_v56, %v561_v58  ;;  %v589_v56 = vpop.permute.xlu0 %588 }
  0xf1   : > { %659 = vmatpush.msra.mxu1 %v569_v62 }
  0xf3   : > { %660 = vmatpush.msra.mxu1 %v568_v2 }
  0xf5   : > { %661 = vmatpush.msra.mxu1 %v567_v6 }
  0xf7   : > { %662 = vmatpush.msra.mxu1 %v566_v10  ;;  %v752_v10 = vrot.slane %v750_v9, 4 }
  0xf9   : > { %663 = vmatpush.msra.mxu1 %v565_v12 }
  0xfb   : > { %664 = vmatpush.msra.mxu1 %v564_v14 }
  0xfd   : > { %665 = vmatpush.msra.mxu1 %v563_v16 }
  0xff   : > { %666 = vmatpush.msra.mxu1 %v562_v18 }
 0x100   : > { %947 = vmatmul.msk.f32.vlgmr.msra.gmra.mxu1 %vm626_vm9, %v570_v17  ;;  %v760_v17 = vmul.f32 -0.5, %v750_v9 }
 0x108   : > { %948 = vmatmul.msk.f32.gmra.mxu1 %vm626_vm9, %v571_v19 }
 0x110   : > { %949 = vmatmul.msk.f32.gmra.mxu1 %vm626_vm9, %v572_v20 }
 0x118   : > { %950 = vmatmul.msk.f32.gmra.mxu1 %vm626_vm9, %v573_v21 }
 0x120   : > { %951 = vmatmul.msk.f32.gmra.mxu1 %vm626_vm9, %v574_v22 }
 0x128   : > { %952 = vmatmul.msk.f32.gmra.mxu1 %vm626_vm9, %v575_v23 }
 0x130   : > { %953 = vmatmul.msk.f32.gmra.mxu1 %vm626_vm9, %v576_v24 }
 0x138   : > { %954 = vmatmul.msk.f32.gmra.mxu1 %vm626_vm9, %v577_v25 }
 0x17d   : > { %v668_v26 = vpop.f32.mrf.mxu1 }
 0x17e   : > { %v669_v57 = vadd.f32 %v668_v26, %v589_v56 }
 0x180   : > { %v700_v63 = vmul.f32 0.01, %v669_v57  ;;  %vm692_vm1 = vcmp.ge.f32.partialorder %v669_v57, 0.0 }
 0x182   : > { %v708_v2 = vsel %vm692_vm1, %v669_v57, %v700_v63 }
 0x185   : > { %v671_v27 = vpop.f32.mrf.mxu1 }
 0x186   : > { %v672_v53 = vadd.f32 %v671_v27, %v594_v52 }
 0x188   : > { %v701_v61 = vmul.f32 0.01, %v672_v53  ;;  %vm693_vm0 = vcmp.ge.f32.partialorder %v672_v53, 0.0 }
 0x18a   : > { %v709_v0 = vsel %vm693_vm0, %v672_v53, %v701_v61 }
 0x18d   : > { %v674_v28 = vpop.f32.mrf.mxu1 }
 0x18e   : > { %v675_v49 = vadd.f32 %v674_v28, %v599_v48 }
 0x190   : > { %v702_v59 = vmul.f32 0.01, %v675_v49  ;;  %vm694_vm15 = vcmp.ge.f32.partialorder %v675_v49, 0.0 }
 0x192   : > { %v710_v62 = vsel %vm694_vm15, %v675_v49, %v702_v59 }
 0x195   : > { %v677_v29 = vpop.f32.mrf.mxu1 }
 0x196   : > { %v678_v45 = vadd.f32 %v677_v29, %v604_v38 }
 0x198   : > { %v703_v55 = vmul.f32 0.01, %v678_v45  ;;  %vm695_vm14 = vcmp.ge.f32.partialorder %v678_v45, 0.0 }
 0x19a   : > { %v711_v60 = vsel %vm695_vm14, %v678_v45, %v703_v55 }
 0x19d   : > { %v680_v30 = vpop.f32.mrf.mxu1 }
 0x19e   : > { %v681_v42 = vadd.f32 %v680_v30, %v609_v36 }
 0x1a0   : > { %v704_v51 = vmul.f32 0.01, %v681_v42  ;;  %vm696_vm13 = vcmp.ge.f32.partialorder %v681_v42, 0.0 }
 0x1a2   : > { %v712_v58 = vsel %vm696_vm13, %v681_v42, %v704_v51 }
 0x1a5   : > { %v683_v31 = vpop.f32.mrf.mxu1 }
 0x1a6   : > { %v684_v40 = vadd.f32 %v683_v31, %v614_v35 }
 0x1a8   : > { %v705_v47 = vmul.f32 0.01, %v684_v40  ;;  %vm697_vm12 = vcmp.ge.f32.partialorder %v684_v40, 0.0 }
 0x1aa   : > { %v713_v54 = vsel %vm697_vm12, %v684_v40, %v705_v47 }
 0x1ad   : > { %v686_v34 = vpop.f32.mrf.mxu1 }
 0x1ae   : > { %v687_v37 = vadd.f32 %v686_v34, %v619_v33 }
 0x1b0   : > { %v706_v44 = vmul.f32 0.01, %v687_v37  ;;  %vm698_vm11 = vcmp.ge.f32.partialorder %v687_v37, 0.0 }
 0x1b2   : > { %v714_v50 = vsel %vm698_vm11, %v687_v37, %v706_v44 }
 0x1b5   : > { %v689_v39 = vpop.f32.mrf.mxu1 }
 0x1b6   : > { %v690_v41 = vadd.f32 %v689_v39, %v624_v32 }
 0x1b8   : > { %vm699_vm10 = vcmp.ge.f32.partialorder %v690_v41, 0.0  ;;  %v707_v43 = vmul.f32 0.01, %v690_v41 }
 0x1ba   : > { %v715_v46 = vsel %vm699_vm10, %v690_v41, %v707_v43 }
 0x1bb   : > { %734 = vmatpush.msrb.mxu2 %v715_v46 }
 0x1bd   : > { %735 = vmatpush.msrb.mxu2 %v714_v50 }
 0x1bf   : > { %736 = vmatpush.msrb.mxu2 %v713_v54 }
 0x1c1   : > { %737 = vmatpush.msrb.mxu2 %v712_v58 }
 0x1c3   : > { %738 = vmatpush.msrb.mxu2 %v711_v60 }
 0x1c5   : > { %739 = vmatpush.msrb.mxu2 %v710_v62 }
 0x1c7   : > { %740 = vmatpush.msrb.mxu2 %v709_v0 }
 0x1c9   : > { %741 = vmatpush.msrb.mxu2 %v708_v2 }
 0x1ca   : > { %955 = vmatmul.msk.f32.vlgmr.msrb.gmra.mxu2 %vm626_vm9, %v716_v1 }
 0x24d   : > { %v743_v4 = vpop.f32.mrf.mxu2 }
 0x24e   : > { %v744_v5 = vadd.f32 %v743_v4, %v721_v3 }
 0x250   : > { %v746_v6 = vmax.f32 %v744_v5, -20.0 }
 0x252   : > { %v747_v7 = vmin.f32 %v746_v6, 2.0 }
 0x254   : > { %v748_v8 = vmul.f32 1.442695, %v747_v7 }
 0x256   : > { %1041 = vpow2.f32 %v748_v8 }
 0x25c   : > { %v1042_v11 = vpop.eup %1041 }
 0x25d   : > { %v754_v12 = vmul.f32 %v1042_v11, %v752_v10 }
 0x25f   : > { %v756_v13 = vrot.slane %v754_v12, 4 }
 0x261   : > { %v758_v14 = vadd.f32 %v756_v13, %v744_v5 }
 0x263   : > { %1043 = vtanh.f32 %v758_v14 }
 0x269   : > { %v1044_v15 = vpop.eup %1043 }
 0x26a   : > { %v767_v16 = vmul.f32 %v1044_v15, %v1044_v15  ;;  %773 = vst [vmem:[%s343_s23] sm:$0xf] %v1044_v15 }
 0x26b   : > { %1074 = shalt.err (!%p1071_p4)
}
 0x26c   : > { %993 = dma.vmem_to_hbm [thread:$0]  (%p1232_p5), %s801_s25, 64, %s803_s24, %s784_s26   ;;  %v768_v18 = vsub.f32 1.0, %v767_v16  ;;  %v761_v20 = vmul.f32 %v760_v17, %v750_v9  ;;  %v763_v21 = vrot.slane %v747_v7, 4  ;;  %vm774_vm2 = vcmask 1043456  }
 0x26d   : > { %s811_s24 = scalar_lea.hbm %s1497_s9, %s1215_s13  ;;  %s349_s26 = scalar_lea.vmem [#allocation4], %s1437_s29 }
 0x26e   : > { %v769_v19 = vadd.f32 1e-06, %v768_v18  ;;  %v765_v22 = vsub.f32 %v761_v20, %v763_v21  ;;  %s813_s27 = sshll.u32 %s349_s26, 4  ;;  %s815_s28 = sshll.u32 %s811_s24, 4  ;;  %s814_s27 = int_to_ptr.vmem [resolvable:$true] %s813_s27  ;;  %s816_s28 = int_to_ptr.hbm [resolvable:$true] %s815_s28 }
 0x26f   : > { %s789_s14 = scalar_lea.sflag [#allocation5], %s1437_s29  ;;  %s1089_s17 = sshra.s32 %s816_s28, 4  ;;  %s1090_s17 = int_to_ptr.hbm [resolvable:$true] %s1089_s17 }
 0x270   : > { %1045 = vlog2.f32 %v769_v19  ;;  %v956_v24 = vadd.f32 -0.9189385, %v765_v22  ;;  %s1091_s16 = scalar_lea.hbm %s1090_s17, 1  ;;  %s1095_s13 = scalar_lea.hbm %s1497_s9, 2 }
 0x271   : > { %p1092_p7 = scmp.ne.s32.totalorder %s1090_s17, %s1091_s16  ;;  %p1096_p10 = scmp.lt.s32.totalorder %s1090_s17, %s1497_s9 }
 0x272   : > { %p1097_p11 = scmp.lt.s32.totalorder %s1095_s13, %s1091_s16 }
 0x273   : > { %p1093_p8 = pnand %p1092_p7, %p1232_p5 }
 0x274   : > { %p1098_p12 = por %p1097_p11, %p1096_p10 }
 0x275   : > { %p1094_p9 = pneg %p1093_p8 }
 0x276   : > { %v1046_v23 = vpop.eup %1045 }
 0x277   : > { %v771_v25 = vmul.f32 0.6931472, %v1046_v23  ;;  %p1099_p13 = pnand %p1098_p12, %p1094_p9 }
 0x279   : > { %v772_v26 = vsub.f32 %v956_v24, %v771_v25 }
 0x27b   : > { %v775_v27 = vsel %vm774_vm2, %v772_v26, 0.0 }
 0x27c   : > { %v776_v28 = vrot.slane %v775_v27, 4 }
 0x27e   : > { %v777_v29 = vadd.f32 %v776_v28, %v775_v27 }
 0x280   : > { %v778_v30 = vrot.slane %v777_v29, 2 }
 0x282   : > { %v779_v31 = vadd.f32 %v778_v30, %v777_v29 }
 0x284   : > { %v780_v32 = vrot.slane %v779_v31, 1 }
 0x286   : > { %v781_v33 = vadd.f32 %v780_v32, %v779_v31 }
 0x288   : > { %782 = vst [vmem:[%s349_s26] sm:$0x1] %v781_v33 }
 0x289   : > { %1102 = shalt.err (!%p1099_p13)
}
 0x28a   : > { %994 = dma.vmem_to_hbm [thread:$0]  (%p1232_p5), %s814_s27, 16, %s816_s28, %s789_s14  }
 0x28b PF: > { %p1004_p0 = scmp.ge.s32.totalorder %s1141_s12, 2  ;;  %s827_s29 = sand.u32 1, %s1129_s30  }
 0x28c   : > { %s828_s24 = scalar_lea.sflag [#allocation3], %s827_s29 }
 0x28d   : > { %p998_p1 = pnand %p1004_p0, %p1236_p6 }
 0x28f   : > { %p999_p2 = pneg %p998_p1 }
 0x291   : > { %1120 = dma.done.wait (%p999_p2), %s828_s24, 64  }
 0x292   : > { %1122 = vsyncadd (%p999_p2), %s828_s24, 4294967232  ;;  %s838_s26 = scalar_lea.sflag [#allocation5], %s827_s29 }
 0x293   : > { %1124 = dma.done.wait (%p999_p2), %s838_s26, 16  }
 0x294   : > { %1126 = vsyncadd (%p999_p2), %s838_s26, 4294967280  ;;  %p23_p5 = scmp.ge.s32.totalorder %s1219_s15, 4   ;;  %s1500_s30 = smov %s1133_s10 }
 0x295   : > { %s1501_s10 = smov %s1137_s11  ;;  %s1502_s11 = smov %s1230_s18 }
 0x296   : > { %s1503_s12 = smov %s1219_s15  ;;  %25 = sbr.rel (!%p23_p5) target bundleno = 5 (0x5), region = 107 }
 0x29b   :  { %843 = vsyncpa [#allocation3], 1 }
 0x29c   :  { %845 = vsyncpa [#allocation3 + $0x1], 1 }
 0x29d   :  { %846 = vsyncpa [#allocation5], 1 }
 0x29e   :  { %848 = vsyncpa [#allocation5 + $0x1], 1 }

</bundles_post_ra>
